<compile_context>
chip_gen: v5e
topology: v5e:2x2
jax: 0.10.0
libtpu: 0.0.40
codegen_flags: <defaults>
</compile_context>

<pallas_src>
import jax
import jax.numpy as jnp
from jax.experimental import pallas as pl
from jax.experimental.pallas import tpu as pltpu


def _ufm_kernel(x_ref, w1_ref, b1_ref, w2_ref, b2_ref,
                cw1_ref, cb1_ref, cw2_ref, cb2_ref,
                out_ref, contrib_ref):
    # --- NAM feature nets, all patches fused via block-diagonal weights ---
    # [B, P*D] @ [P*D, P*H] -> ReLU -> [B, P*H]
    h = jnp.dot(x_ref[...], w1_ref[...], preferred_element_type=jnp.float32)
    h = jnp.maximum(h + b1_ref[...], 0.0)
    # [B, P*H] @ [P*H, P] -> per-patch contributions [B, P] (lane-dense slab).
    c = jnp.dot(h, w2_ref[...], preferred_element_type=jnp.float32)
    c = c + b2_ref[...]
    contrib_ref[...] = c

    # --- Additive score + classifier MLP, on the VPU/XLU (no tiny MXU passes) ---
    s = jnp.sum(c, axis=-1, keepdims=True)                    # [B, 1]
    # Linear(1, 32): (B,1) x (1,32) contraction over K=1 == broadcast multiply.
    z = jnp.maximum(s * cw1_ref[...] + cb1_ref[...], 0.0)      # [B, 32]
    # Linear(32, 1): contraction to N=1 == elementwise mul + lane reduce.
    o = jnp.sum(z * cw2_ref[...], axis=-1, keepdims=True) + cb2_ref[...]
    out_ref[...] = o                                           # [B, 1]


def ufm_client_model(img, params, *, patch_size):
    """img: [B, C, H, W] float32 (NCHW).  Returns (out [B,1], contribs [B,P])."""
    B, C, H, W = img.shape
    gh, gw = H // patch_size, W // patch_size
    P = gh * gw
    D = C * patch_size * patch_size
    Hdim = params["w1"].shape[-1]
    PD, PH = P * D, P * Hdim

    # Pure-JAX layout plumbing: extract patches -> [B, P*D] (patch p occupies
    # the contiguous segment p*D:(p+1)*D, flattened (C, ps, ps) row-major).
    # TODO(synk): for large images, DMA patch windows straight from HBM inside
    # the kernel instead of this wrapper-side relayout.
    x = img.reshape(B, C, gh, patch_size, gw, patch_size)
    x = x.transpose(0, 2, 4, 1, 3, 5)                 # [B, gh, gw, C, ps, ps]
    x_flat = x.reshape(B, PD).astype(jnp.float32)

    w1, b1, w2, b2 = params["w1"], params["b1"], params["w2"], params["b2"]

    # Pack the P independent per-patch MLPs into block-diagonal weights so the
    # whole NAM layer is two dense MXU matmuls.
    eye_p = jnp.eye(P, dtype=jnp.float32)
    w1_bd = jnp.einsum("pq,pdh->pdqh", eye_p, w1).reshape(PD, PH)   # [P*D, P*H]
    w2_bd = jnp.einsum("pq,ph->phq", eye_p, w2[:, :, 0]).reshape(PH, P)
    b1_flat = b1[:, 0, :].reshape(1, PH)
    b2_flat = b2[:, 0, 0].reshape(1, P)

    cw1 = params["cw1"]                      # (1, 32)
    cb1 = params["cb1"]                      # (1, 32)
    cw2_row = params["cw2"].reshape(1, 32)   # (32, 1) -> (1, 32) row
    cb2 = params["cb2"]                      # (1, 1)

    grid_spec = pltpu.PrefetchScalarGridSpec(
        num_scalar_prefetch=0,
        grid=(1,),                                       # single step: everything resident
        in_specs=[
            pl.BlockSpec((B, PD), lambda i: (0, 0)),     # x_flat
            pl.BlockSpec((PD, PH), lambda i: (0, 0)),    # W1 block-diag
            pl.BlockSpec((1, PH), lambda i: (0, 0)),     # b1
            pl.BlockSpec((PH, P), lambda i: (0, 0)),     # W2 block-diag
            pl.BlockSpec((1, P), lambda i: (0, 0)),      # b2
            pl.BlockSpec((1, 32), lambda i: (0, 0)),     # cw1
            pl.BlockSpec((1, 32), lambda i: (0, 0)),     # cb1
            pl.BlockSpec((1, 32), lambda i: (0, 0)),     # cw2 (as a row)
            pl.BlockSpec((1, 1), lambda i: (0, 0)),      # cb2
        ],
        out_specs=[
            pl.BlockSpec((B, 1), lambda i: (0, 0)),      # out
            pl.BlockSpec((B, P), lambda i: (0, 0)),      # contribs (lane-dense)
        ],
    )

    out, contribs = pl.pallas_call(
        _ufm_kernel,
        out_shape=(
            jax.ShapeDtypeStruct((B, 1), jnp.float32),
            jax.ShapeDtypeStruct((B, P), jnp.float32),
        ),
        grid_spec=grid_spec,
        compiler_params=pltpu.CompilerParams(
            dimension_semantics=("arbitrary",)),
    )(x_flat, w1_bd, b1_flat, w2_bd, b2_flat, cw1, cb1, cw2_row, cb2)

    return out, contribs


def _reference(img, params, *, patch_size):
    """Pure-JAX reference of the same forward pass (natural weight layout)."""
    B, C, H, W = img.shape
    gh, gw = H // patch_size, W // patch_size
    P = gh * gw
    D = C * patch_size * patch_size
    x = img.reshape(B, C, gh, patch_size, gw, patch_size)
    x = x.transpose(2, 4, 0, 1, 3, 5).reshape(P, B, D).astype(jnp.float32)

    h = jnp.maximum(jnp.einsum("pbd,pdh->pbh", x, params["w1"]) + params["b1"], 0.0)
    c = jnp.einsum("pbh,pho->pbo", h, params["w2"]) + params["b2"]    # [P, B, 1]
    contribs = c[:, :, 0].T                                           # [B, P]
    score = contribs.sum(-1, keepdims=True)                           # [B, 1]
    z = jnp.maximum(score @ params["cw1"] + params["cb1"], 0.0)
    out = z @ params["cw2"] + params["cb2"]
    return out, contribs


def init_params(key, *, num_patches, patch_dim, hidden=32):
    ks = jax.random.split(key, 8)
    s = 0.1
    return {
        # Per-patch NAM feature nets (each patch gets its own MLP).
        "w1": s * jax.random.normal(ks[0], (num_patches, patch_dim, hidden), jnp.float32),
        "b1": s * jax.random.normal(ks[1], (num_patches, 1, hidden), jnp.float32),
        "w2": s * jax.random.normal(ks[2], (num_patches, hidden, 1), jnp.float32),
        "b2": s * jax.random.normal(ks[3], (num_patches, 1, 1), jnp.float32),
        # classifier: Linear(1,32) -> ReLU -> Linear(32,1), stored as [in,out].
        "cw1": s * jax.random.normal(ks[4], (1, 32), jnp.float32),
        "cb1": s * jax.random.normal(ks[5], (1, 32), jnp.float32),
        "cw2": s * jax.random.normal(ks[6], (32, 1), jnp.float32),
        "cb2": s * jax.random.normal(ks[7], (1, 1), jnp.float32),
    }


if __name__ == "__main__":
    # Small config: 4x4 grid of 4x4 patches over a 16x16 single-channel image.
    B, C, H, W = 2, 1, 16, 16
    patch_size = 4
    num_patches = (H // patch_size) * (W // patch_size)   # 16
    patch_dim = C * patch_size * patch_size               # 16

    key = jax.random.PRNGKey(0)
    k_img, k_par = jax.random.split(key)
    img = jax.random.normal(k_img, (B, C, H, W), jnp.float32)
    params = init_params(k_par, num_patches=num_patches, patch_dim=patch_dim)

    out, patch_contribs = ufm_client_model(img, params, patch_size=patch_size)
    out = jax.block_until_ready(out)
    patch_contribs = jax.block_until_ready(patch_contribs)

    ref_out, ref_contribs = _reference(img, params, patch_size=patch_size)
    assert out.shape == (B, 1) and patch_contribs.shape == (B, num_patches)
    assert jnp.allclose(out, ref_out, atol=1e-5, rtol=1e-5)
    assert jnp.allclose(patch_contribs, ref_contribs, atol=1e-5, rtol=1e-5)

    print("KERNEL_OK")
</pallas_src>

<mosaic_0001>
module attributes {stable_mosaic.version = 11 : i64} {
  func.func @_ufm_kernel(%arg0: i32, %arg1: memref<2x256xf32, #tpu.memory_space<vmem>>, %arg2: memref<256x512xf32, #tpu.memory_space<vmem>>, %arg3: memref<1x512xf32, #tpu.memory_space<vmem>>, %arg4: memref<512x16xf32, #tpu.memory_space<vmem>>, %arg5: memref<1x16xf32, #tpu.memory_space<vmem>>, %arg6: memref<1x32xf32, #tpu.memory_space<vmem>>, %arg7: memref<1x32xf32, #tpu.memory_space<vmem>>, %arg8: memref<1x32xf32, #tpu.memory_space<vmem>>, %arg9: memref<1x1xf32, #tpu.memory_space<vmem>>, %arg10: memref<2x1xf32, #tpu.memory_space<vmem>>, %arg11: memref<2x16xf32, #tpu.memory_space<vmem>>) attributes {dimension_semantics = [#tpu.dimension_semantics<arbitrary>], iteration_bounds = array<i64: 1>, scalar_prefetch = 0 : i64, scratch_operands = 0 : i64, tpu.core_type = #tpu.core_type<tc>, window_params = [{pipeline_mode = #tpu.pipeline_mode<synchronous>, transform_indices = @transform_0, window_bounds = array<i64: 2, 256>}, {pipeline_mode = #tpu.pipeline_mode<synchronous>, transform_indices = @transform_1, window_bounds = array<i64: 256, 512>}, {pipeline_mode = #tpu.pipeline_mode<synchronous>, transform_indices = @transform_2, window_bounds = array<i64: 1, 512>}, {pipeline_mode = #tpu.pipeline_mode<synchronous>, transform_indices = @transform_3, window_bounds = array<i64: 512, 16>}, {pipeline_mode = #tpu.pipeline_mode<synchronous>, transform_indices = @transform_4, window_bounds = array<i64: 1, 16>}, {pipeline_mode = #tpu.pipeline_mode<synchronous>, transform_indices = @transform_5, window_bounds = array<i64: 1, 32>}, {pipeline_mode = #tpu.pipeline_mode<synchronous>, transform_indices = @transform_6, window_bounds = array<i64: 1, 32>}, {pipeline_mode = #tpu.pipeline_mode<synchronous>, transform_indices = @transform_7, window_bounds = array<i64: 1, 32>}, {pipeline_mode = #tpu.pipeline_mode<synchronous>, transform_indices = @transform_8, window_bounds = array<i64: 1, 1>}, {pipeline_mode = #tpu.pipeline_mode<synchronous>, transform_indices = @transform_9, window_bounds = array<i64: 2, 1>}, {pipeline_mode = #tpu.pipeline_mode<synchronous>, transform_indices = @transform_10, window_bounds = array<i64: 2, 16>}]} {
    %c0 = arith.constant 0 : index
    %c0_0 = arith.constant 0 : index
    %0 = vector.load %arg1[%c0, %c0_0] : memref<2x256xf32, #tpu.memory_space<vmem>>, vector<2x256xf32>
    %c0_1 = arith.constant 0 : index
    %c0_2 = arith.constant 0 : index
    %1 = vector.load %arg2[%c0_1, %c0_2] : memref<256x512xf32, #tpu.memory_space<vmem>>, vector<256x512xf32>
    %cst = arith.constant dense<0.000000e+00> : vector<2x512xf32>
    %2 = tpu.matmul %0, %1, %cst {dimension_numbers = #tpu.dot_dimension_numbers<[1], [0], [0], [1], [0, 0, 1, 1], [], []>} : vector<2x256xf32>, vector<256x512xf32>, vector<2x512xf32> -> vector<2x512xf32>
    %c0_3 = arith.constant 0 : index
    %c0_4 = arith.constant 0 : index
    %3 = vector.load %arg3[%c0_3, %c0_4] : memref<1x512xf32, #tpu.memory_space<vmem>>, vector<1x512xf32>
    %4 = vector.broadcast %3 : vector<1x512xf32> to vector<2x512xf32>
    %5 = arith.addf %2, %4 : vector<2x512xf32>
    %cst_5 = arith.constant 0.000000e+00 : f32
    %6 = vector.broadcast %cst_5 : f32 to vector<2x512xf32>
    %7 = arith.maximumf %5, %6 : vector<2x512xf32>
    %c0_6 = arith.constant 0 : index
    %c0_7 = arith.constant 0 : index
    %8 = vector.load %arg4[%c0_6, %c0_7] : memref<512x16xf32, #tpu.memory_space<vmem>>, vector<512x16xf32>
    %cst_8 = arith.constant dense<0.000000e+00> : vector<2x16xf32>
    %9 = tpu.matmul %7, %8, %cst_8 {dimension_numbers = #tpu.dot_dimension_numbers<[1], [0], [0], [1], [0, 0, 1, 1], [], []>} : vector<2x512xf32>, vector<512x16xf32>, vector<2x16xf32> -> vector<2x16xf32>
    %c0_9 = arith.constant 0 : index
    %c0_10 = arith.constant 0 : index
    %10 = vector.load %arg5[%c0_9, %c0_10] : memref<1x16xf32, #tpu.memory_space<vmem>>, vector<1x16xf32>
    %11 = vector.broadcast %10 : vector<1x16xf32> to vector<2x16xf32>
    %12 = arith.addf %9, %11 : vector<2x16xf32>
    %c0_11 = arith.constant 0 : index
    %c0_12 = arith.constant 0 : index
    %13 = vector.load %arg11[%c0_11, %c0_12] : memref<2x16xf32, #tpu.memory_space<vmem>>, vector<2x16xf32>
    tpu.vector_store %arg11[%c0_11, %c0_12], %12 {strides = array<i32>} : memref<2x16xf32, #tpu.memory_space<vmem>>, vector<2x16xf32>,
    %cst_13 = arith.constant dense<0.000000e+00> : vector<2xf32>
    %14 = vector.multi_reduction <add>, %12, %cst_13 [1] : vector<2x16xf32> to vector<2xf32>
    %15 = vector.shape_cast %14 : vector<2xf32> to vector<2x1xf32>
    %c0_14 = arith.constant 0 : index
    %c0_15 = arith.constant 0 : index
    %16 = vector.load %arg6[%c0_14, %c0_15] : memref<1x32xf32, #tpu.memory_space<vmem>>, vector<1x32xf32>
    %17 = vector.broadcast %15 : vector<2x1xf32> to vector<2x32xf32>
    %18 = vector.broadcast %16 : vector<1x32xf32> to vector<2x32xf32>
    %19 = arith.mulf %17, %18 : vector<2x32xf32>
    %c0_16 = arith.constant 0 : index
    %c0_17 = arith.constant 0 : index
    %20 = vector.load %arg7[%c0_16, %c0_17] : memref<1x32xf32, #tpu.memory_space<vmem>>, vector<1x32xf32>
    %21 = vector.broadcast %20 : vector<1x32xf32> to vector<2x32xf32>
    %22 = arith.addf %19, %21 : vector<2x32xf32>
    %cst_18 = arith.constant 0.000000e+00 : f32
    %23 = vector.broadcast %cst_18 : f32 to vector<2x32xf32>
    %24 = arith.maximumf %22, %23 : vector<2x32xf32>
    %c0_19 = arith.constant 0 : index
    %c0_20 = arith.constant 0 : index
    %25 = vector.load %arg8[%c0_19, %c0_20] : memref<1x32xf32, #tpu.memory_space<vmem>>, vector<1x32xf32>
    %26 = vector.broadcast %25 : vector<1x32xf32> to vector<2x32xf32>
    %27 = arith.mulf %24, %26 : vector<2x32xf32>
    %cst_21 = arith.constant dense<0.000000e+00> : vector<2xf32>
    %28 = vector.multi_reduction <add>, %27, %cst_21 [1] : vector<2x32xf32> to vector<2xf32>
    %29 = vector.shape_cast %28 : vector<2xf32> to vector<2x1xf32>
    %c0_22 = arith.constant 0 : index
    %c0_23 = arith.constant 0 : index
    %30 = vector.load %arg9[%c0_22, %c0_23] : memref<1x1xf32, #tpu.memory_space<vmem>>, vector<1x1xf32>
    %31 = vector.broadcast %30 : vector<1x1xf32> to vector<2x1xf32>
    %32 = arith.addf %29, %31 : vector<2x1xf32>
    %c0_24 = arith.constant 0 : index
    %c0_25 = arith.constant 0 : index
    %33 = vector.load %arg10[%c0_24, %c0_25] : memref<2x1xf32, #tpu.memory_space<vmem>>, vector<2x1xf32>
    tpu.vector_store %arg10[%c0_24, %c0_25], %32 {strides = array<i32>} : memref<2x1xf32, #tpu.memory_space<vmem>>, vector<2x1xf32>,
    return
  }
  func.func @transform_0(%arg0: i32) -> (i32, i32) {
    %c0_i32 = arith.constant 0 : i32
    %c0_i32_0 = arith.constant 0 : i32
    %c0_i32_1 = arith.constant 0 : i32
    return %c0_i32, %c0_i32_0 : i32, i32
  }
  func.func @transform_1(%arg0: i32) -> (i32, i32) {
    %c0_i32 = arith.constant 0 : i32
    %c0_i32_0 = arith.constant 0 : i32
    %c0_i32_1 = arith.constant 0 : i32
    return %c0_i32, %c0_i32_0 : i32, i32
  }
  func.func @transform_2(%arg0: i32) -> (i32, i32) {
    %c0_i32 = arith.constant 0 : i32
    %c0_i32_0 = arith.constant 0 : i32
    %c0_i32_1 = arith.constant 0 : i32
    return %c0_i32, %c0_i32_0 : i32, i32
  }
  func.func @transform_3(%arg0: i32) -> (i32, i32) {
    %c0_i32 = arith.constant 0 : i32
    %c0_i32_0 = arith.constant 0 : i32
    %c0_i32_1 = arith.constant 0 : i32
    return %c0_i32, %c0_i32_0 : i32, i32
  }
  func.func @transform_4(%arg0: i32) -> (i32, i32) {
    %c0_i32 = arith.constant 0 : i32
    %c0_i32_0 = arith.constant 0 : i32
    %c0_i32_1 = arith.constant 0 : i32
    return %c0_i32, %c0_i32_0 : i32, i32
  }
  func.func @transform_5(%arg0: i32) -> (i32, i32) {
    %c0_i32 = arith.constant 0 : i32
    %c0_i32_0 = arith.constant 0 : i32
    %c0_i32_1 = arith.constant 0 : i32
    return %c0_i32, %c0_i32_0 : i32, i32
  }
  func.func @transform_6(%arg0: i32) -> (i32, i32) {
    %c0_i32 = arith.constant 0 : i32
    %c0_i32_0 = arith.constant 0 : i32
    %c0_i32_1 = arith.constant 0 : i32
    return %c0_i32, %c0_i32_0 : i32, i32
  }
  func.func @transform_7(%arg0: i32) -> (i32, i32) {
    %c0_i32 = arith.constant 0 : i32
    %c0_i32_0 = arith.constant 0 : i32
    %c0_i32_1 = arith.constant 0 : i32
    return %c0_i32, %c0_i32_0 : i32, i32
  }
  func.func @transform_8(%arg0: i32) -> (i32, i32) {
    %c0_i32 = arith.constant 0 : i32
    %c0_i32_0 = arith.constant 0 : i32
    %c0_i32_1 = arith.constant 0 : i32
    return %c0_i32, %c0_i32_0 : i32, i32
  }
  func.func @transform_9(%arg0: i32) -> (i32, i32) {
    %c0_i32 = arith.constant 0 : i32
    %c0_i32_0 = arith.constant 0 : i32
    %c0_i32_1 = arith.constant 0 : i32
    return %c0_i32, %c0_i32_0 : i32, i32
  }
  func.func @transform_10(%arg0: i32) -> (i32, i32) {
    %c0_i32 = arith.constant 0 : i32
    %c0_i32_0 = arith.constant 0 : i32
    %c0_i32_1 = arith.constant 0 : i32
    return %c0_i32, %c0_i32_0 : i32, i32
  }
}

</mosaic_0001>

<bundles_post_ra>
// kernel: tpu_custom_call.1
= control target key start
LH: loop header
LB: loop body
LE: loop exit
PB: predicated region body
PF: predicated region fallthrough
CT: control target
= control target key end

     0   :  { %s905_s0 = inlined_call_operand.vmem [shape: f32[2,256], index: 0, kind: input, shape index: {}]   ;;  %s906_s1 = inlined_call_operand.hbm [shape: f32[256,512], index: 1, kind: input, shape index: {}]   ;;  %s907_s2 = inlined_call_operand.vmem [shape: f32[1,512], index: 2, kind: input, shape index: {}]   ;;  %s908_s3 = inlined_call_operand.vmem [shape: f32[512,16], index: 3, kind: input, shape index: {}]   ;;  %s909_s4 = inlined_call_operand.vmem [shape: f32[1,16], index: 4, kind: input, shape index: {}]   ;;  %s910_s5 = inlined_call_operand.vmem [shape: f32[1,32], index: 5, kind: input, shape index: {}]   ;;  %s911_s6 = inlined_call_operand.vmem [shape: f32[1,32], index: 6, kind: input, shape index: {}]   ;;  %s912_s7 = inlined_call_operand.vmem [shape: f32[1,32], index: 7, kind: input, shape index: {}]   ;;  %s913_s8 = inlined_call_operand.<no memory space> [shape: f32[1,1], index: 8, kind: input, shape index: {}]   ;;  %s914_s9 = inlined_call_operand.vmem [shape: f32[2,1], index: 9, kind: output, shape index: {0}]   ;;  %s915_s10 = inlined_call_operand.hbm [shape: f32[2,16], index: 10, kind: output, shape index: {1}]  }
   0x1   :  { %v16_v0 = vstv %s913_s8 }
   0x2   :  { %17 = vst [vmem:[#allocation2] sm:$0x1] %v16_v0 }
   0x3   :  { %18 = vsyncpa [#allocation4], 0 }
   0x4   :  { %19 = vsyncpa [#allocation5], 0  ;;  %s26_s17 = sshll.u32 %s906_s1, 4  ;;  %s624_s18 = smov [#allocation3]   ;;  %s27_s17 = int_to_ptr.hbm [resolvable:$true] %s26_s17 }
   0x5   :  { %s28_s19 = sshll.u32 %s624_s18, 4  ;;  %s625_s20 = smov 512   ;;  %s29_s19 = int_to_ptr.vmem [resolvable:$true] %s28_s19 }
   0x6   :  { %s626_s21 = smov 32  }
   0x7   :  { %34 = dma.hbm_to_vmem [thread:$0]  %s27_s17, 16384, %s29_s19, [#allocation4], %s625_s20, %s625_s20, %s626_s21  }
   0x8   :  { %620 = dma.done.wait [#allocation4], 16384  }
   0x9   :  { %621 = vsyncadd [#allocation4], 4294950912  ;;  %v114_v1 = vld [vmem:[#allocation3 + $0x1e0] sm:$0xff]  ;;  %v115_v2 = vld [vmem:[#allocation3 + $0x1e8] sm:$0xff]  ;;  %vm510_vm0 = vcmask 123904   ;;  %s627_s18 = smov [#allocation6]  }
   0xa   :  { %v110_v3 = vld [vmem:[#allocation3 + $0x1c0] sm:$0xff]  ;;  %198 = vmatpush.msra.mxu0 %v114_v1  ;;  %238 = vmatpush.msra.mxu2 %v115_v2  ;;  %v111_v5 = vld [vmem:[#allocation3 + $0x1c8] sm:$0xff]  ;;  %v116_v63 = vld [vmem:[#allocation3 + $0x1f0] sm:$0xff]  ;;  %s549_s19 = sshll.u32 %s627_s18, 4  ;;  %s551_s21 = sshll.u32 %s915_s10, 4  ;;  %vm531_vm1 = vcmask 254976   ;;  %s550_s19 = int_to_ptr.vmem [resolvable:$true] %s549_s19  ;;  %s552_s21 = int_to_ptr.hbm [resolvable:$true] %s551_s21 }
   0xb   :  { %v178_v4 = vld [vmem:[#allocation3 + $0x3e0] sm:$0xff]  ;;  %v179_v6 = vld [vmem:[#allocation3 + $0x3e8] sm:$0xff]  ;;  %v117_v0 = vld [vmem:[#allocation3 + $0x1f8] sm:$0xff]  ;;  %vm540_vm2 = vcmask 1024  }
   0xc   :  { %218 = vmatpush.msra.mxu1 %v178_v4  ;;  %258 = vmatpush.msra.mxu3 %v179_v6  ;;  %v106_v7 = vld [vmem:[#allocation3 + $0x1a0] sm:$0xff]  ;;  %v107_v9 = vld [vmem:[#allocation3 + $0x1a8] sm:$0xff]  ;;  %v180_v4 = vld [vmem:[#allocation3 + $0x3f0] sm:$0xff] }
   0xd   :  { %v174_v8 = vld [vmem:[#allocation3 + $0x3c0] sm:$0xff]  ;;  %199 = vmatpush.msra.mxu0 %v110_v3  ;;  %239 = vmatpush.msra.mxu2 %v111_v5  ;;  %v175_v10 = vld [vmem:[#allocation3 + $0x3c8] sm:$0xff]  ;;  %v112_v3 = vld [vmem:[#allocation3 + $0x1d0] sm:$0xff] }
   0xe   :  { %v170_v11 = vld [vmem:[#allocation3 + $0x3a0] sm:$0xff]  ;;  %219 = vmatpush.msra.mxu1 %v174_v8  ;;  %259 = vmatpush.msra.mxu3 %v175_v10  ;;  %v103_v13 = vld [vmem:[#allocation3 + $0x188] sm:$0xff]  ;;  %v113_v5 = vld [vmem:[#allocation3 + $0x1d8] sm:$0xff] }
   0xf   :  { %v102_v12 = vld [vmem:[#allocation3 + $0x180] sm:$0xff]  ;;  %v171_v14 = vld [vmem:[#allocation3 + $0x3a8] sm:$0xff]  ;;  %200 = vmatpush.msra.mxu0 %v106_v7  ;;  %240 = vmatpush.msra.mxu2 %v107_v9  ;;  %v181_v6 = vld [vmem:[#allocation3 + $0x3f8] sm:$0xff] }
  0x10   :  { %v166_v15 = vld [vmem:[#allocation3 + $0x380] sm:$0xff]  ;;  %v167_v16 = vld [vmem:[#allocation3 + $0x388] sm:$0xff]  ;;  %220 = vmatpush.msra.mxu1 %v170_v11  ;;  %260 = vmatpush.msra.mxu3 %v171_v14  ;;  %v108_v7 = vld [vmem:[#allocation3 + $0x1b0] sm:$0xff] }
  0x11   :  { %v98_v17 = vld [vmem:[#allocation3 + $0x160] sm:$0xff]  ;;  %v99_v18 = vld [vmem:[#allocation3 + $0x168] sm:$0xff]  ;;  %201 = vmatpush.msra.mxu0 %v102_v12  ;;  %241 = vmatpush.msra.mxu2 %v103_v13  ;;  %v176_v8 = vld [vmem:[#allocation3 + $0x3d0] sm:$0xff] }
  0x12   :  { %v162_v19 = vld [vmem:[#allocation3 + $0x360] sm:$0xff]  ;;  %v163_v20 = vld [vmem:[#allocation3 + $0x368] sm:$0xff]  ;;  %221 = vmatpush.msra.mxu1 %v166_v15  ;;  %261 = vmatpush.msra.mxu3 %v167_v16  ;;  %v109_v9 = vld [vmem:[#allocation3 + $0x1b8] sm:$0xff] }
  0x13   :  { %v94_v21 = vld [vmem:[#allocation3 + $0x140] sm:$0xff]  ;;  %v95_v22 = vld [vmem:[#allocation3 + $0x148] sm:$0xff]  ;;  %202 = vmatpush.msra.mxu0 %v98_v17  ;;  %242 = vmatpush.msra.mxu2 %v99_v18  ;;  %v177_v10 = vld [vmem:[#allocation3 + $0x3d8] sm:$0xff] }
  0x14   :  { %v158_v23 = vld [vmem:[#allocation3 + $0x340] sm:$0xff]  ;;  %v159_v24 = vld [vmem:[#allocation3 + $0x348] sm:$0xff]  ;;  %222 = vmatpush.msra.mxu1 %v162_v19  ;;  %262 = vmatpush.msra.mxu3 %v163_v20  ;;  %v104_v11 = vld [vmem:[#allocation3 + $0x190] sm:$0xff] }
  0x15   :  { %v90_v25 = vld [vmem:[#allocation3 + $0x120] sm:$0xff]  ;;  %v91_v26 = vld [vmem:[#allocation3 + $0x128] sm:$0xff]  ;;  %203 = vmatpush.msra.mxu0 %v94_v21  ;;  %243 = vmatpush.msra.mxu2 %v95_v22  ;;  %v172_v12 = vld [vmem:[#allocation3 + $0x3b0] sm:$0xff] }
  0x16   :  { %v154_v27 = vld [vmem:[#allocation3 + $0x320] sm:$0xff]  ;;  %v155_v28 = vld [vmem:[#allocation3 + $0x328] sm:$0xff]  ;;  %223 = vmatpush.msra.mxu1 %v158_v23  ;;  %263 = vmatpush.msra.mxu3 %v159_v24  ;;  %v105_v13 = vld [vmem:[#allocation3 + $0x198] sm:$0xff] }
  0x17   :  { %v86_v29 = vld [vmem:[#allocation3 + $0x100] sm:$0xff]  ;;  %v87_v30 = vld [vmem:[#allocation3 + $0x108] sm:$0xff]  ;;  %204 = vmatpush.msra.mxu0 %v90_v25  ;;  %244 = vmatpush.msra.mxu2 %v91_v26  ;;  %v173_v14 = vld [vmem:[#allocation3 + $0x3b8] sm:$0xff] }
  0x18   :  { %v150_v31 = vld [vmem:[#allocation3 + $0x300] sm:$0xff]  ;;  %v151_v32 = vld [vmem:[#allocation3 + $0x308] sm:$0xff]  ;;  %224 = vmatpush.msra.mxu1 %v154_v27  ;;  %264 = vmatpush.msra.mxu3 %v155_v28  ;;  %v53_v15 = vld [vmem:[%s905_s0] sm:$0xf] }
  0x19   :  { %v82_v33 = vld [vmem:[#allocation3 + $0xe0] sm:$0xff]  ;;  %v83_v34 = vld [vmem:[#allocation3 + $0xe8] sm:$0xff]  ;;  %205 = vmatpush.msra.mxu0 %v86_v29  ;;  %245 = vmatpush.msra.mxu2 %v87_v30  ;;  %v100_v16 = vld [vmem:[#allocation3 + $0x170] sm:$0xff]  ;;  %193 = vst [vmem:[#allocation1] ss:$4 sm:$0xff] %v53_v15 }
  0x1a   :  { %v146_v35 = vld [vmem:[#allocation3 + $0x2e0] sm:$0xff]  ;;  %v147_v36 = vld [vmem:[#allocation3 + $0x2e8] sm:$0xff]  ;;  %225 = vmatpush.msra.mxu1 %v150_v31  ;;  %265 = vmatpush.msra.mxu3 %v151_v32  ;;  %v168_v17 = vld [vmem:[#allocation3 + $0x390] sm:$0xff] }
  0x1b   :  { %v78_v37 = vld [vmem:[#allocation3 + $0xc0] sm:$0xff]  ;;  %v79_v38 = vld [vmem:[#allocation3 + $0xc8] sm:$0xff]  ;;  %206 = vmatpush.msra.mxu0 %v82_v33  ;;  %246 = vmatpush.msra.mxu2 %v83_v34  ;;  %v101_v18 = vld [vmem:[#allocation3 + $0x178] sm:$0xff] }
  0x1c   :  { %v142_v39 = vld [vmem:[#allocation3 + $0x2c0] sm:$0xff]  ;;  %v143_v40 = vld [vmem:[#allocation3 + $0x2c8] sm:$0xff]  ;;  %226 = vmatpush.msra.mxu1 %v146_v35  ;;  %266 = vmatpush.msra.mxu3 %v147_v36  ;;  %v169_v19 = vld [vmem:[#allocation3 + $0x398] sm:$0xff] }
  0x1d   :  { %v74_v41 = vld [vmem:[#allocation3 + $0xa0] sm:$0xff]  ;;  %v75_v42 = vld [vmem:[#allocation3 + $0xa8] sm:$0xff]  ;;  %207 = vmatpush.msra.mxu0 %v78_v37  ;;  %247 = vmatpush.msra.mxu2 %v79_v38  ;;  %v96_v20 = vld [vmem:[#allocation3 + $0x150] sm:$0xff] }
  0x1e   :  { %v138_v43 = vld [vmem:[#allocation3 + $0x2a0] sm:$0xff]  ;;  %v139_v44 = vld [vmem:[#allocation3 + $0x2a8] sm:$0xff]  ;;  %227 = vmatpush.msra.mxu1 %v142_v39  ;;  %267 = vmatpush.msra.mxu3 %v143_v40  ;;  %v164_v21 = vld [vmem:[#allocation3 + $0x370] sm:$0xff] }
  0x1f   :  { %v70_v45 = vld [vmem:[#allocation3 + $0x80] sm:$0xff]  ;;  %v71_v46 = vld [vmem:[#allocation3 + $0x88] sm:$0xff]  ;;  %208 = vmatpush.msra.mxu0 %v74_v41  ;;  %248 = vmatpush.msra.mxu2 %v75_v42  ;;  %v97_v22 = vld [vmem:[#allocation3 + $0x158] sm:$0xff] }
  0x20   :  { %v134_v47 = vld [vmem:[#allocation3 + $0x280] sm:$0xff]  ;;  %v135_v48 = vld [vmem:[#allocation3 + $0x288] sm:$0xff]  ;;  %228 = vmatpush.msra.mxu1 %v138_v43  ;;  %268 = vmatpush.msra.mxu3 %v139_v44  ;;  %v165_v23 = vld [vmem:[#allocation3 + $0x378] sm:$0xff] }
  0x21   :  { %v66_v49 = vld [vmem:[#allocation3 + $0x60] sm:$0xff]  ;;  %v67_v50 = vld [vmem:[#allocation3 + $0x68] sm:$0xff]  ;;  %209 = vmatpush.msra.mxu0 %v70_v45  ;;  %249 = vmatpush.msra.mxu2 %v71_v46  ;;  %v92_v24 = vld [vmem:[#allocation3 + $0x130] sm:$0xff] }
  0x22   :  { %v130_v51 = vld [vmem:[#allocation3 + $0x260] sm:$0xff]  ;;  %v131_v52 = vld [vmem:[#allocation3 + $0x268] sm:$0xff]  ;;  %229 = vmatpush.msra.mxu1 %v134_v47  ;;  %269 = vmatpush.msra.mxu3 %v135_v48  ;;  %v160_v25 = vld [vmem:[#allocation3 + $0x350] sm:$0xff] }
  0x23   :  { %v62_v53 = vld [vmem:[#allocation3 + $0x40] sm:$0xff]  ;;  %v63_v54 = vld [vmem:[#allocation3 + $0x48] sm:$0xff]  ;;  %210 = vmatpush.msra.mxu0 %v66_v49  ;;  %250 = vmatpush.msra.mxu2 %v67_v50  ;;  %v93_v26 = vld [vmem:[#allocation3 + $0x138] sm:$0xff] }
  0x24   :  { %v126_v55 = vld [vmem:[#allocation3 + $0x240] sm:$0xff]  ;;  %v127_v56 = vld [vmem:[#allocation3 + $0x248] sm:$0xff]  ;;  %230 = vmatpush.msra.mxu1 %v130_v51  ;;  %270 = vmatpush.msra.mxu3 %v131_v52  ;;  %v161_v27 = vld [vmem:[#allocation3 + $0x358] sm:$0xff] }
  0x25   :  { %v58_v57 = vld [vmem:[#allocation3 + $0x20] sm:$0xff]  ;;  %v59_v58 = vld [vmem:[#allocation3 + $0x28] sm:$0xff]  ;;  %211 = vmatpush.msra.mxu0 %v62_v53  ;;  %251 = vmatpush.msra.mxu2 %v63_v54  ;;  %v88_v28 = vld [vmem:[#allocation3 + $0x110] sm:$0xff] }
  0x26   :  { %v122_v59 = vld [vmem:[#allocation3 + $0x220] sm:$0xff]  ;;  %v123_v60 = vld [vmem:[#allocation3 + $0x228] sm:$0xff]  ;;  %231 = vmatpush.msra.mxu1 %v126_v55  ;;  %271 = vmatpush.msra.mxu3 %v127_v56  ;;  %v156_v29 = vld [vmem:[#allocation3 + $0x330] sm:$0xff] }
  0x27   :  { %v54_v61 = vld [vmem:[#allocation3] sm:$0xff]  ;;  %v55_v62 = vld [vmem:[#allocation3 + $0x8] sm:$0xff]  ;;  %212 = vmatpush.msra.mxu0 %v58_v57  ;;  %252 = vmatpush.msra.mxu2 %v59_v58  ;;  %v89_v30 = vld [vmem:[#allocation3 + $0x118] sm:$0xff] }
  0x28   :  { %232 = vmatpush.msra.mxu1 %v122_v59  ;;  %272 = vmatpush.msra.mxu3 %v123_v60  ;;  %v118_v1 = vld [vmem:[#allocation3 + $0x200] sm:$0xff]  ;;  %v119_v2 = vld [vmem:[#allocation3 + $0x208] sm:$0xff]  ;;  %v157_v31 = vld [vmem:[#allocation3 + $0x338] sm:$0xff] }
  0x29   :  { %213 = vmatpush.msra.mxu0 %v54_v61  ;;  %253 = vmatpush.msra.mxu2 %v55_v62  ;;  %v84_v32 = vld [vmem:[#allocation3 + $0xf0] sm:$0xff]  ;;  %v85_v34 = vld [vmem:[#allocation3 + $0xf8] sm:$0xff] }
  0x2a   :  { %233 = vmatpush.msra.mxu1 %v118_v1  ;;  %273 = vmatpush.msra.mxu3 %v119_v2  ;;  %v152_v33 = vld [vmem:[#allocation3 + $0x310] sm:$0xff]  ;;  %v153_v35 = vld [vmem:[#allocation3 + $0x318] sm:$0xff] }
  0x2b   :  { %278 = vmatpush.msrb.mxu0 %v116_v63  ;;  %318 = vmatpush.msrb.mxu2 %v117_v0  ;;  %v80_v36 = vld [vmem:[#allocation3 + $0xd0] sm:$0xff]  ;;  %v81_v38 = vld [vmem:[#allocation3 + $0xd8] sm:$0xff] }
  0x2c   :  { %298 = vmatpush.msrb.mxu1 %v180_v4  ;;  %338 = vmatpush.msrb.mxu3 %v181_v6  ;;  %v148_v37 = vld [vmem:[#allocation3 + $0x2f0] sm:$0xff]  ;;  %v149_v39 = vld [vmem:[#allocation3 + $0x2f8] sm:$0xff] }
  0x2d   :  { %279 = vmatpush.msrb.mxu0 %v112_v3  ;;  %319 = vmatpush.msrb.mxu2 %v113_v5  ;;  %v76_v40 = vld [vmem:[#allocation3 + $0xb0] sm:$0xff]  ;;  %v77_v42 = vld [vmem:[#allocation3 + $0xb8] sm:$0xff] }
  0x2e   :  { %299 = vmatpush.msrb.mxu1 %v176_v8  ;;  %339 = vmatpush.msrb.mxu3 %v177_v10  ;;  %v144_v41 = vld [vmem:[#allocation3 + $0x2d0] sm:$0xff]  ;;  %v145_v43 = vld [vmem:[#allocation3 + $0x2d8] sm:$0xff]  ;;  %v376_v8 = vld [vmem:[%s908_s3 + $0x70] sm:$0xff] }
  0x2f   :  { %280 = vmatpush.msrb.mxu0 %v108_v7  ;;  %320 = vmatpush.msrb.mxu2 %v109_v9  ;;  %v72_v44 = vld [vmem:[#allocation3 + $0x90] sm:$0xff]  ;;  %v73_v46 = vld [vmem:[#allocation3 + $0x98] sm:$0xff]  ;;  %v392_v9 = vld [vmem:[%s908_s3 + $0xf0] sm:$0xff] }
  0x30   :  { %300 = vmatpush.msrb.mxu1 %v172_v12  ;;  %340 = vmatpush.msrb.mxu3 %v173_v14  ;;  %v140_v45 = vld [vmem:[#allocation3 + $0x2b0] sm:$0xff]  ;;  %v141_v47 = vld [vmem:[#allocation3 + $0x2b8] sm:$0xff]  ;;  %v408_v10 = vld [vmem:[%s908_s3 + $0x170] sm:$0xff] }
  0x31   :  { %281 = vmatpush.msrb.mxu0 %v104_v11  ;;  %321 = vmatpush.msrb.mxu2 %v105_v13  ;;  %v194_v48 = vld.sshfl [vmem:[#allocation1] sm:$0xff pattern:$0x73625140]  ;;  %v195_v53 = vld.sshfl [vmem:[#allocation1 + $0x8] sm:$0xff pattern:$0x73625140] }
  0x32   :  { %301 = vmatpush.msrb.mxu1 %v168_v17  ;;  %341 = vmatpush.msrb.mxu3 %v169_v19  ;;  %v68_v49 = vld [vmem:[#allocation3 + $0x70] sm:$0xff]  ;;  %v69_v51 = vld [vmem:[#allocation3 + $0x78] sm:$0xff]  ;;  %v424_v11 = vld [vmem:[%s908_s3 + $0x1f0] sm:$0xff] }
  0x33   :  { %282 = vmatpush.msrb.mxu0 %v100_v16  ;;  %322 = vmatpush.msrb.mxu2 %v101_v18  ;;  %v136_v50 = vld [vmem:[#allocation3 + $0x290] sm:$0xff]  ;;  %v137_v52 = vld [vmem:[#allocation3 + $0x298] sm:$0xff] }
  0x34   :  { %302 = vmatpush.msrb.mxu1 %v164_v21  ;;  %342 = vmatpush.msrb.mxu3 %v165_v23  ;;  %v64_v54 = vld [vmem:[#allocation3 + $0x50] sm:$0xff]  ;;  %v65_v56 = vld [vmem:[#allocation3 + $0x58] sm:$0xff] }
  0x35   :  { %283 = vmatpush.msrb.mxu0 %v96_v20  ;;  %323 = vmatpush.msrb.mxu2 %v97_v22  ;;  %v132_v55 = vld [vmem:[#allocation3 + $0x270] sm:$0xff]  ;;  %v133_v57 = vld [vmem:[#allocation3 + $0x278] sm:$0xff] }
  0x36   :  { %303 = vmatpush.msrb.mxu1 %v160_v25  ;;  %343 = vmatpush.msrb.mxu3 %v161_v27  ;;  %v60_v58 = vld [vmem:[#allocation3 + $0x30] sm:$0xff]  ;;  %v61_v60 = vld [vmem:[#allocation3 + $0x38] sm:$0xff]  ;;  %v388_v25 = vld [vmem:[%s908_s3 + $0xd0] sm:$0xff] }
  0x37   :  { %284 = vmatpush.msrb.mxu0 %v92_v24  ;;  %324 = vmatpush.msrb.mxu2 %v93_v26  ;;  %v128_v59 = vld [vmem:[#allocation3 + $0x250] sm:$0xff]  ;;  %v129_v61 = vld [vmem:[#allocation3 + $0x258] sm:$0xff]  ;;  %v372_v24 = vld [vmem:[%s908_s3 + $0x50] sm:$0xff] }
  0x38   :  { %304 = vmatpush.msrb.mxu1 %v156_v29  ;;  %344 = vmatpush.msrb.mxu3 %v157_v31  ;;  %v56_v62 = vld [vmem:[#allocation3 + $0x10] sm:$0xff]  ;;  %v57_v0 = vld [vmem:[#allocation3 + $0x18] sm:$0xff]  ;;  %v404_v26 = vld [vmem:[%s908_s3 + $0x150] sm:$0xff] }
  0x39   :  { %285 = vmatpush.msrb.mxu0 %v88_v28  ;;  %325 = vmatpush.msrb.mxu2 %v89_v30  ;;  %v124_v63 = vld [vmem:[#allocation3 + $0x230] sm:$0xff]  ;;  %v125_v1 = vld [vmem:[#allocation3 + $0x238] sm:$0xff] }
  0x3a   :  { %305 = vmatpush.msrb.mxu1 %v152_v33  ;;  %345 = vmatpush.msrb.mxu3 %v153_v35  ;;  %v120_v2 = vld [vmem:[#allocation3 + $0x210] sm:$0xff]  ;;  %v121_v3 = vld [vmem:[#allocation3 + $0x218] sm:$0xff]  ;;  %v368_v35 = vld [vmem:[%s908_s3 + $0x30] sm:$0xff] }
  0x3b   :  { %286 = vmatpush.msrb.mxu0 %v84_v32  ;;  %326 = vmatpush.msrb.mxu2 %v85_v34  ;;  %v377_v4 = vld [vmem:[%s908_s3 + $0x78] sm:$0xff]  ;;  %v375_v12 = vld [vmem:[%s908_s3 + $0x68] sm:$0xff]  ;;  %v374_v16 = vld [vmem:[%s908_s3 + $0x60] sm:$0xff] }
  0x3c   :  { %306 = vmatpush.msrb.mxu1 %v148_v37  ;;  %346 = vmatpush.msrb.mxu3 %v149_v39  ;;  %v393_v5 = vld [vmem:[%s908_s3 + $0xf8] sm:$0xff]  ;;  %v391_v13 = vld [vmem:[%s908_s3 + $0xe8] sm:$0xff]  ;;  %v390_v17 = vld [vmem:[%s908_s3 + $0xe0] sm:$0xff] }
  0x3d   :  { %287 = vmatpush.msrb.mxu0 %v80_v36  ;;  %327 = vmatpush.msrb.mxu2 %v81_v38  ;;  %v409_v6 = vld [vmem:[%s908_s3 + $0x178] sm:$0xff]  ;;  %v407_v14 = vld [vmem:[%s908_s3 + $0x168] sm:$0xff]  ;;  %v406_v18 = vld [vmem:[%s908_s3 + $0x160] sm:$0xff] }
  0x3e   :  { %307 = vmatpush.msrb.mxu1 %v144_v41  ;;  %347 = vmatpush.msrb.mxu3 %v145_v43  ;;  %v425_v7 = vld [vmem:[%s908_s3 + $0x1f8] sm:$0xff]  ;;  %v423_v15 = vld [vmem:[%s908_s3 + $0x1e8] sm:$0xff]  ;;  %v422_v19 = vld [vmem:[%s908_s3 + $0x1e0] sm:$0xff] }
  0x3f   :  { %288 = vmatpush.msrb.mxu0 %v76_v40  ;;  %328 = vmatpush.msrb.mxu2 %v77_v42  ;;  %v373_v20 = vld [vmem:[%s908_s3 + $0x58] sm:$0xff]  ;;  %v371_v27 = vld [vmem:[%s908_s3 + $0x48] sm:$0xff]  ;;  %v370_v30 = vld [vmem:[%s908_s3 + $0x40] sm:$0xff] }
  0x40   :  { %308 = vmatpush.msrb.mxu1 %v140_v45  ;;  %348 = vmatpush.msrb.mxu3 %v141_v47  ;;  %v389_v21 = vld [vmem:[%s908_s3 + $0xd8] sm:$0xff]  ;;  %v387_v28 = vld [vmem:[%s908_s3 + $0xc8] sm:$0xff]  ;;  %v386_v31 = vld [vmem:[%s908_s3 + $0xc0] sm:$0xff] }
  0x41   :  { %289 = vmatpush.msrb.mxu0 %v72_v44  ;;  %329 = vmatpush.msrb.mxu2 %v73_v46  ;;  %v405_v22 = vld [vmem:[%s908_s3 + $0x158] sm:$0xff]  ;;  %v403_v29 = vld [vmem:[%s908_s3 + $0x148] sm:$0xff]  ;;  %v402_v32 = vld [vmem:[%s908_s3 + $0x140] sm:$0xff] }
  0x42   :  { %214 = vmatmul.f32.vlgmr.msra.gmra.mxu0 %v194_v48  ;;  %254 = vmatmul.f32.vlgmr.msra.gmra.mxu2 %v194_v48  ;;  %v421_v23 = vld [vmem:[%s908_s3 + $0x1d8] sm:$0xff]  ;;  %v367_v36 = vld [vmem:[%s908_s3 + $0x28] sm:$0xff]  ;;  %v384_v37 = vld [vmem:[%s908_s3 + $0xb0] sm:$0xff] }
  0x43   :  { %290 = vmatpush.msrb.mxu0 %v68_v49  ;;  %309 = vmatpush.msrb.mxu1 %v136_v50  ;;  %v369_v33 = vld [vmem:[%s908_s3 + $0x38] sm:$0xff]  ;;  %v420_v39 = vld [vmem:[%s908_s3 + $0x1d0] sm:$0xff]  ;;  %v366_v40 = vld [vmem:[%s908_s3 + $0x20] sm:$0xff] }
  0x44   :  { %330 = vmatpush.msrb.mxu2 %v69_v51  ;;  %349 = vmatpush.msrb.mxu3 %v137_v52  ;;  %v385_v34 = vld [vmem:[%s908_s3 + $0xb8] sm:$0xff]  ;;  %v383_v41 = vld [vmem:[%s908_s3 + $0xa8] sm:$0xff]  ;;  %v400_v42 = vld [vmem:[%s908_s3 + $0x130] sm:$0xff] }
  0x45   :  { %234 = vmatmul.f32.vlgmr.msra.gmra.mxu1 %v195_v53  ;;  %274 = vmatmul.f32.vlgmr.msra.gmra.mxu3 %v195_v53  ;;  %v401_v38 = vld [vmem:[%s908_s3 + $0x138] sm:$0xff]  ;;  %v419_v43 = vld [vmem:[%s908_s3 + $0x1c8] sm:$0xff]  ;;  %v382_v45 = vld [vmem:[%s908_s3 + $0xa0] sm:$0xff] }
  0x46   :  { %291 = vmatpush.msrb.mxu0 %v64_v54  ;;  %310 = vmatpush.msrb.mxu1 %v132_v55  ;;  %v365_v44 = vld [vmem:[%s908_s3 + $0x18] sm:$0xff]  ;;  %v399_v46 = vld [vmem:[%s908_s3 + $0x128] sm:$0xff]  ;;  %v418_v47 = vld [vmem:[%s908_s3 + $0x1c0] sm:$0xff] }
  0x47   :  { %331 = vmatpush.msrb.mxu2 %v65_v56  ;;  %350 = vmatpush.msrb.mxu3 %v133_v57  ;;  %v381_v49 = vld [vmem:[%s908_s3 + $0x98] sm:$0xff]  ;;  %v398_v50 = vld [vmem:[%s908_s3 + $0x120] sm:$0xff]  ;;  %v363_v52 = vld [vmem:[%s908_s3 + $0x8] sm:$0xff] }
  0x48   :  { %292 = vmatpush.msrb.mxu0 %v60_v58  ;;  %311 = vmatpush.msrb.mxu1 %v128_v59  ;;  %v417_v51 = vld [vmem:[%s908_s3 + $0x1b8] sm:$0xff]  ;;  %v416_v55 = vld [vmem:[%s908_s3 + $0x1b0] sm:$0xff]  ;;  %v362_v56 = vld [vmem:[%s908_s3] sm:$0xff] }
  0x49   :  { %332 = vmatpush.msrb.mxu2 %v61_v60  ;;  %351 = vmatpush.msrb.mxu3 %v129_v61  ;;  %v397_v54 = vld [vmem:[%s908_s3 + $0x118] sm:$0xff]  ;;  %v379_v57 = vld [vmem:[%s908_s3 + $0x88] sm:$0xff]  ;;  %v396_v58 = vld [vmem:[%s908_s3 + $0x110] sm:$0xff] }
  0x4a   :  { %293 = vmatpush.msrb.mxu0 %v56_v62  ;;  %312 = vmatpush.msrb.mxu1 %v124_v63  ;;  %v415_v59 = vld [vmem:[%s908_s3 + $0x1a8] sm:$0xff]  ;;  %v378_v60 = vld [vmem:[%s908_s3 + $0x80] sm:$0xff] }
  0x4b   :  { %333 = vmatpush.msrb.mxu2 %v57_v0  ;;  %352 = vmatpush.msrb.mxu3 %v125_v1  ;;  %v395_v61 = vld [vmem:[%s908_s3 + $0x108] sm:$0xff]  ;;  %v414_v62 = vld [vmem:[%s908_s3 + $0x1a0] sm:$0xff]  ;;  %v413_v0 = vld [vmem:[%s908_s3 + $0x198] sm:$0xff] }
  0x4c   :  { %294 = vmatmul.f32.vlgmr.msrb.gmra.mxu0 %v194_v48  ;;  %334 = vmatmul.f32.vlgmr.msrb.gmra.mxu2 %v194_v48  ;;  %v364_v48 = vld [vmem:[%s908_s3 + $0x10] sm:$0xff]  ;;  %v394_v63 = vld [vmem:[%s908_s3 + $0x100] sm:$0xff] }
  0x4d   :  { %313 = vmatpush.msrb.mxu1 %v120_v2  ;;  %353 = vmatpush.msrb.mxu3 %v121_v3  ;;  %v412_v1 = vld [vmem:[%s908_s3 + $0x190] sm:$0xff]  ;;  %v411_v2 = vld [vmem:[%s908_s3 + $0x188] sm:$0xff]  ;;  %v410_v3 = vld [vmem:[%s908_s3 + $0x180] sm:$0xff] }
  0x4e   :  { %314 = vmatmul.f32.vlgmr.msrb.gmra.mxu1 %v195_v53  ;;  %354 = vmatmul.f32.vlgmr.msrb.gmra.mxu3 %v195_v53  ;;  %v380_v53 = vld [vmem:[%s908_s3 + $0x90] sm:$0xff] }
  0x4f   :  { %430 = vmatpush.msra.mxu0 %v377_v4  ;;  %450 = vmatpush.msra.mxu1 %v393_v5  ;;  %v182_v4 = vld [vmem:[%s907_s2] sm:$0xf] }
  0x50   :  { %470 = vmatpush.msra.mxu2 %v409_v6  ;;  %490 = vmatpush.msra.mxu3 %v425_v7  ;;  %v184_v5 = vperm.slane %v182_v4, 0 }
  0x51   :  { %431 = vmatpush.msra.mxu0 %v376_v8  ;;  %451 = vmatpush.msra.mxu1 %v392_v9  ;;  %v185_v9 = vperm.slane %v182_v4, 1 }
  0x52   :  { %471 = vmatpush.msra.mxu2 %v408_v10  ;;  %491 = vmatpush.msra.mxu3 %v424_v11 }
  0x53   :  { %432 = vmatpush.msra.mxu0 %v375_v12  ;;  %452 = vmatpush.msra.mxu1 %v391_v13 }
  0x54   :  { %472 = vmatpush.msra.mxu2 %v407_v14  ;;  %492 = vmatpush.msra.mxu3 %v423_v15  ;;  %v186_v14 = vperm.slane %v182_v4, 2 }
  0x55   :  { %433 = vmatpush.msra.mxu0 %v374_v16  ;;  %453 = vmatpush.msra.mxu1 %v390_v17 }
  0x56   :  { %473 = vmatpush.msra.mxu2 %v406_v18  ;;  %493 = vmatpush.msra.mxu3 %v422_v19 }
  0x57   :  { %434 = vmatpush.msra.mxu0 %v373_v20  ;;  %454 = vmatpush.msra.mxu1 %v389_v21 }
  0x58   :  { %474 = vmatpush.msra.mxu2 %v405_v22  ;;  %494 = vmatpush.msra.mxu3 %v421_v23  ;;  %v187_v22 = vperm.slane %v182_v4, 3 }
  0x59   :  { %435 = vmatpush.msra.mxu0 %v372_v24  ;;  %455 = vmatpush.msra.mxu1 %v388_v25 }
  0x5a   :  { %475 = vmatpush.msra.mxu2 %v404_v26  ;;  %495 = vmatpush.msra.mxu3 %v420_v39  ;;  %v568_v39 = vld [vmem:[%s910_s5] ss:$0 sm:$0xff] }
  0x5b   :  { %436 = vmatpush.msra.mxu0 %v371_v27  ;;  %456 = vmatpush.msra.mxu1 %v387_v28 }
  0x5c   :  { %476 = vmatpush.msra.mxu2 %v403_v29  ;;  %496 = vmatpush.msra.mxu3 %v419_v43  ;;  %v567_v29 = vld [vmem:[%s909_s4] ss:$0 sm:$0xff] }
  0x5d   :  { %437 = vmatpush.msra.mxu0 %v370_v30  ;;  %457 = vmatpush.msra.mxu1 %v386_v31 }
  0x5e   :  { %477 = vmatpush.msra.mxu2 %v402_v32  ;;  %497 = vmatpush.msra.mxu3 %v418_v47 }
  0x5f   :  { %438 = vmatpush.msra.mxu0 %v369_v33  ;;  %458 = vmatpush.msra.mxu1 %v385_v34 }
  0x60   :  { %478 = vmatpush.msra.mxu2 %v401_v38  ;;  %498 = vmatpush.msra.mxu3 %v417_v51 }
  0x61   :  { %439 = vmatpush.msra.mxu0 %v368_v35  ;;  %459 = vmatpush.msra.mxu1 %v384_v37 }
  0x62   :  { %479 = vmatpush.msra.mxu2 %v400_v42  ;;  %499 = vmatpush.msra.mxu3 %v416_v55 }
  0x63   :  { %440 = vmatpush.msra.mxu0 %v367_v36  ;;  %460 = vmatpush.msra.mxu1 %v383_v41 }
  0x64   :  { %480 = vmatpush.msra.mxu2 %v399_v46  ;;  %500 = vmatpush.msra.mxu3 %v415_v59 }
  0x65   :  { %441 = vmatpush.msra.mxu0 %v366_v40  ;;  %461 = vmatpush.msra.mxu1 %v382_v45  ;;  %v569_v40 = vld [vmem:[%s911_s6] ss:$0 sm:$0xff] }
  0x66   :  { %481 = vmatpush.msra.mxu2 %v398_v50  ;;  %501 = vmatpush.msra.mxu3 %v414_v62 }
  0x67   :  { %442 = vmatpush.msra.mxu0 %v365_v44  ;;  %462 = vmatpush.msra.mxu1 %v381_v49  ;;  %v570_v44 = vld [vmem:[%s912_s7] ss:$0 sm:$0xff] }
  0x68   :  { %482 = vmatpush.msra.mxu2 %v397_v54  ;;  %502 = vmatpush.msra.mxu3 %v413_v0 }
  0x69   :  { %443 = vmatpush.msra.mxu0 %v364_v48  ;;  %463 = vmatpush.msra.mxu1 %v380_v53  ;;  %v571_v48 = vld [vmem:[#allocation2] ss:$0 sm:$0xff] }
  0x6a   :  { %483 = vmatpush.msra.mxu2 %v396_v58  ;;  %503 = vmatpush.msra.mxu3 %v412_v1 }
  0x6b   :  { %444 = vmatpush.msra.mxu0 %v363_v52  ;;  %464 = vmatpush.msra.mxu1 %v379_v57 }
  0x6c   :  { %484 = vmatpush.msra.mxu2 %v395_v61  ;;  %504 = vmatpush.msra.mxu3 %v411_v2 }
  0x6d   :  { %445 = vmatpush.msra.mxu0 %v362_v56  ;;  %465 = vmatpush.msra.mxu1 %v378_v60 }
  0x6e   :  { %485 = vmatpush.msra.mxu2 %v394_v63  ;;  %505 = vmatpush.msra.mxu3 %v410_v3 }
  0xbf   :  { %v215_v6 = vpop.f32.mrf.mxu0 }
  0xc0   :  { %v216_v7 = vadd.f32 %v215_v6, %v184_v5 }
  0xc2   :  { %v235_v8 = vpop.f32.mrf.mxu1 }
  0xc3   :  { %v236_v10 = vadd.f32 %v235_v8, %v216_v7 }
  0xc5   :  { %v358_v11 = vmax.f32 %v236_v10, 0.0  ;;  %v255_v12 = vpop.f32.mrf.mxu2 }
  0xc6   :  { %v256_v13 = vadd.f32 %v255_v12, %v185_v9 }
  0xc7   :  { %446 = vmatmul.f32.vlgmr.msra.gmra.mxu0 %v358_v11 }
  0xc8   :  { %v275_v15 = vpop.f32.mrf.mxu3 }
  0xc9   :  { %v276_v16 = vadd.f32 %v275_v15, %v256_v13  ;;  %v295_v17 = vpop.f32.mrf.mxu0 }
  0xca   :  { %v296_v18 = vadd.f32 %v295_v17, %v186_v14 }
  0xcb   :  { %v359_v19 = vmax.f32 %v276_v16, 0.0  ;;  %v315_v20 = vpop.f32.mrf.mxu1 }
  0xcc   :  { %v316_v21 = vadd.f32 %v315_v20, %v296_v18 }
  0xcd   :  { %466 = vmatmul.f32.vlgmr.msra.gmra.mxu1 %v359_v19 }
  0xce   :  { %v360_v23 = vmax.f32 %v316_v21, 0.0 }
  0xcf   :  { %v335_v24 = vpop.f32.mrf.mxu2 }
  0xd0   :  { %v336_v25 = vadd.f32 %v335_v24, %v187_v22  ;;  %486 = vmatmul.f32.vlgmr.msra.gmra.mxu2 %v360_v23 }
  0xd1   :  { %v355_v26 = vpop.f32.mrf.mxu3 }
  0xd2   :  { %v356_v27 = vadd.f32 %v355_v26, %v336_v25 }
  0xd4   :  { %v361_v28 = vmax.f32 %v356_v27, 0.0 }
  0xd6   :  { %506 = vmatmul.f32.vlgmr.msra.gmra.mxu3 %v361_v28 }
 0x144   :  { %v447_v30 = vpop.f32.mrf.mxu0 }
 0x145   :  { %v448_v31 = vadd.f32 %v567_v29, %v447_v30 }
 0x14a   :  { %v467_v32 = vpop.f32.mrf.mxu1 }
 0x14b   :  { %v468_v34 = vadd.f32 %v467_v32, %v448_v31 }
 0x153   :  { %v487_v33 = vpop.f32.mrf.mxu2 }
 0x154   :  { %v488_v35 = vadd.f32 %v487_v33, %v468_v34 }
 0x159   :  { %v507_v36 = vpop.f32.mrf.mxu3 }
 0x15a   :  { %v508_v37 = vadd.f32 %v507_v36, %v488_v35 }
 0x15c   :  { %v512_v38 = vsel %vm510_vm0, %v508_v37, 0.0  ;;  %511 = vst.msk [vmem:[#allocation6] sm:$0x3] %vm510_vm0, %v508_v37 }
 0x15d   :  { %513 = vadd.xlane.f32.xlu0 %v512_v38  ;;  %554 = dma.vmem_to_hbm [thread:$0]  %s550_s19, 32, %s552_s21, [#allocation5]  }
 0x1d0   :  { %v514_v41 = vpop.xlane.xlu0 %513 }
 0x1d1   :  { %v519_v42 = vmul.f32 %v568_v39, %v514_v41 }
 0x1d3   :  { %v524_v43 = vadd.f32 %v569_v40, %v519_v42 }
 0x1d5   :  { %v525_v45 = vmax.f32 %v524_v43, 0.0 }
 0x1d7   :  { %v530_v46 = vmul.f32 %v570_v44, %v525_v45 }
 0x1d9   :  { %v532_v47 = vsel %vm531_vm1, %v530_v46, 0.0 }
 0x1da   :  { %533 = vadd.xlane.f32.xlu0 %v532_v47 }
 0x24d   :  { %v534_v49 = vpop.xlane.xlu0 %533 }
 0x24e   :  { %v539_v50 = vadd.f32 %v571_v48, %v534_v49 }
 0x250   :  { %541 = vst.msk [vmem:[%s914_s9] sm:$0x3] %vm540_vm2, %v539_v50 }
 0x251   :  { %622 = dma.done.wait [#allocation5], 32  }
 0x252   :  { %623 = vsyncadd [#allocation5], 4294967264 }
 0x253   :  { %561 = vsyncpa [#allocation4], 1 }
 0x254   :  { %562 = vsyncpa [#allocation5], 1 }

</bundles_post_ra>
